<compile_context>
chip_gen: v6e
topology: v6e:2x2x1
jax: 0.10.0
libtpu: 0.0.40
codegen_flags: <defaults>
</compile_context>

<pallas_src>
import functools

import jax
import jax.numpy as jnp
from jax.experimental import pallas as pl
from jax.experimental.pallas import tpu as pltpu


_VMEM_LIMIT_BYTES = 48 * 1024 * 1024   # raise v5e/v6e scoped defaults (16/32 MiB); still fits v7x's 64 MiB/TC
_VMEM_TILE_BUDGET = 28 * 1024 * 1024   # budget for all blk-proportional live data (I/O double buffers + intermediates)


def _density_kernel(layer_meta, x_ref, prm_ref, o_ref):
    """x (Cb, blk), prm (Cb, K) packed precomputed params, out (Cb, blk).

    layer_meta: per-layer static tuples (M, P, h_off, b_off, b2_off, a_off) of column
    offsets into the packed parameter slab. For layer 0, b_off/b2_off are the biases
    with the +1/2 / -1/2 input shift pre-folded in; a_off is -1 for the final layer.
    """
    x = x_ref[...].astype(jnp.float32)            # (Cb, blk)
    prm = prm_ref[...].astype(jnp.float32)        # (Cb, K)

    def col(j):                                   # (Cb, 1) column, broadcast vs (Cb, blk)
        return prm[:, j:j + 1]

    # ---- layer 0 (input width 1): share x*softplus(H0) between the two branches ----
    _, p0, h0, bp0, bm0, a0 = layer_meta[0]
    hp, hm = [], []
    for p in range(p0):
        prod = x * col(h0 + p)                    # shared first-layer matvec
        hp.append(prod + col(bp0 + p))            # c(x + 1/2) branch (shift folded into bias)
        hm.append(prod + col(bm0 + p))            # c(x - 1/2) branch
    if a0 >= 0:                                   # activation g() unless single-layer model
        for p in range(p0):
            ta = col(a0 + p)                      # tanh(a) precomputed in the wrapper
            hp[p] = hp[p] + ta * jnp.tanh(hp[p])
            hm[p] = hm[p] + ta * jnp.tanh(hm[p])

    # ---- remaining layers: per-channel (M x P) matvec, unrolled on the VPU ----
    for k in range(1, len(layer_meta)):
        m, pw, hoff, boff, _, aoff = layer_meta[k]
        yp, ym = [], []
        for p in range(pw):
            b = col(boff + p)
            w = col(hoff + p)                     # i = 0 weight column (flat index i*P + p)
            accp = b + hp[0] * w
            accm = b + hm[0] * w
            for i in range(1, m):
                w = col(hoff + i * pw + p)        # each weight-column broadcast emitted once,
                accp = accp + hp[i] * w           # shared by both shifted branches
                accm = accm + hm[i] * w
            yp.append(accp)
            ym.append(accm)
        if aoff >= 0:
            for p in range(pw):
                ta = col(aoff + p)
                yp[p] = yp[p] + ta * jnp.tanh(yp[p])
                ym[p] = ym[p] + ta * jnp.tanh(ym[p])
        hp, hm = yp, ym

    # Final layer has a single unit: sigmoid each branch, subtract.
    # NOTE: the direct difference of two sigmoids underflows in the far tails; kept
    # as-is to match the PyTorch reference exactly (clamp happens outside, like torch).
    o_ref[...] = (jax.nn.sigmoid(hp[0]) - jax.nn.sigmoid(hm[0])).astype(o_ref.dtype)


def _pack_params(Hs, bs, as_):
    """Precompute softplus(H_k) / tanh(a_k) once (grid-invariant), fold the ±1/2 input
    shift into two first-layer biases, and pack everything into one (C, K) slab."""
    num_layers = len(Hs)
    channels = int(Hs[0].shape[0])
    cols, meta, off = [], [], 0
    for k in range(num_layers):
        m, pw = int(Hs[k].shape[1]), int(Hs[k].shape[2])
        hsp = jax.nn.softplus(Hs[k].astype(jnp.float32))             # (C, M, P)
        h_off = off
        cols.append(hsp.reshape(channels, m * pw)); off += m * pw
        if k == 0:
            w0 = hsp[:, 0, :]                                        # (C, P); M == 1
            b0 = bs[0].astype(jnp.float32)
            b_off = off; cols.append(b0 + 0.5 * w0); off += pw       # bias for c(x + 1/2)
            b2_off = off; cols.append(b0 - 0.5 * w0); off += pw      # bias for c(x - 1/2)
        else:
            b_off = off; cols.append(bs[k].astype(jnp.float32)); off += pw
            b2_off = -1
        if k < num_layers - 1:
            a_off = off; cols.append(jnp.tanh(as_[k].astype(jnp.float32))); off += pw
        else:
            a_off = -1
        meta.append((m, pw, h_off, b_off, b2_off, a_off))
    slab = jnp.concatenate(cols, axis=-1)                            # (C, K), K ~ a few dozen
    return slab, tuple(meta)


def density_estimator_forward(x_cb, Hs, bs, as_, *, block_b=32768, block_c=64):
    """DensityEstimator forward, p(x) = c(x + 1/2) - c(x - 1/2).

    Args:
      x_cb: (C, B) float32 — channels on sublanes, batch on lanes (equivalent to the
            PyTorch (B, C, 1) input without wrapper transposes).
      Hs / bs / as_: per-layer parameters with PyTorch shapes (C, M, P) / (C, P) / (C, P).
    Returns:
      (C, B) float32 densities.
    """
    x_cb = x_cb.astype(jnp.float32)
    C, B = x_cb.shape

    slab, layer_meta = _pack_params(Hs, bs, as_)
    K = int(slab.shape[-1])
    widths = [int(H.shape[2]) for H in Hs]
    max_width = max([1] + widths)

    # --- channel tiling (only kicks in for realistic C, e.g. 128-192 latent channels) ---
    if C > block_c:
        cb = max(8, (block_c // 8) * 8)                  # sublane-aligned channel tile
        cpad = ((C + cb - 1) // cb) * cb
    else:
        cb, cpad = C, C                                  # single block == full dim (always legal)

    # --- batch tile: as large as the VMEM budget allows, multiple of 128 lanes ---
    bpad128 = ((B + 127) // 128) * 128
    per_lane_bytes = 4 * cb * (8 + 4 * max_width)        # f32: I/O double buffers + live branch intermediates
    blk_cap = max(128, (_VMEM_TILE_BUDGET // per_lane_bytes) // 128 * 128)
    blk = max(128, (min(block_b, bpad128, blk_cap) // 128) * 128)
    # keep >= 2 batch grid steps when possible so v7x's two TensorCores both get work
    if bpad128 >= 2 * 128 and 2 * blk > bpad128:
        blk = max(128, (((bpad128 // 2) + 127) // 128) * 128)
    bpad = ((B + blk - 1) // blk) * blk

    if (cpad, bpad) != (C, B):
        x_cb = jnp.pad(x_cb, ((0, cpad - C), (0, bpad - B)))
    if cpad != C:
        slab = jnp.pad(slab, ((0, cpad - C), (0, 0)))

    sum_mp = sum(int(H.shape[1]) * int(H.shape[2]) for H in Hs)
    sum_hidden = sum(widths[:-1])
    cost = pl.CostEstimate(
        flops=4 * B * C * sum_mp,                        # 2 branches x 2 flops per MAC
        transcendentals=2 * B * C * (sum_hidden + 1),    # per-element tanh chain + final sigmoid
        bytes_accessed=8 * B * C)                        # read x + write p, f32

    out = pl.pallas_call(
        functools.partial(_density_kernel, layer_meta),
        grid=(cpad // cb, bpad // blk),
        in_specs=[pl.BlockSpec((cb, blk), lambda ci, bi: (ci, bi)),
                  pl.BlockSpec((cb, K), lambda ci, bi: (ci, 0))],   # packed params, VMEM-resident
        out_specs=pl.BlockSpec((cb, blk), lambda ci, bi: (ci, bi)),
        out_shape=jax.ShapeDtypeStruct((cpad, bpad), jnp.float32),
        compiler_params=pltpu.CompilerParams(
            dimension_semantics=("parallel", "parallel"),
            vmem_limit_bytes=_VMEM_LIMIT_BYTES),
        cost_estimate=cost,
    )(x_cb, slab)

    return out[:C, :B] if (cpad, bpad) != (C, B) else out


def reference_forward(x, Hs, bs, as_):
    """Pure-JAX transcription of the PyTorch module ((B, C, 1) layout), for checks."""
    num_layers = len(Hs)

    def c(t):
        for k in range(num_layers - 1):
            t = jnp.einsum('bni,nip->bnp', t, jax.nn.softplus(Hs[k])) + bs[k]
            t = t + jnp.tanh(as_[k]) * jnp.tanh(t)
        t = jnp.einsum('bni,nip->bnp', t, jax.nn.softplus(Hs[-1])) + bs[-1]
        return jax.nn.sigmoid(t)

    return c(x + 0.5) - c(x - 0.5)


def init_params(key, layer_sizes, channels):
    """Deterministic stand-in for torch.randn parameter init."""
    num_layers = len(layer_sizes) + 1
    full_sizes = [1] + list(layer_sizes) + [1]
    keys = jax.random.split(key, 3 * num_layers)
    ki = iter(range(3 * num_layers))

    Hs = [jax.random.normal(keys[next(ki)],
                            (channels, full_sizes[i], full_sizes[i + 1]),
                            jnp.float32)
          for i in range(num_layers)]
    bs = [jax.random.normal(keys[next(ki)], (channels, full_sizes[i]), jnp.float32)
          for i in range(1, num_layers + 1)]
    as_ = [jax.random.normal(keys[next(ki)], (channels, sz), jnp.float32)
           for sz in layer_sizes]
    return Hs, bs, as_


if __name__ == "__main__":
    layer_sizes = [3, 4, 2]   # DensityEstimator([3, 4, 2]) -> 1 -> 3 -> 4 -> 2 -> 1
    channels = 8
    batch = 512               # batch on lanes; tiled into >= 2 grid steps

    key = jax.random.PRNGKey(0)
    kx, kp = jax.random.split(key)

    Hs, bs, as_ = init_params(kp, layer_sizes, channels)
    x_cb = jax.random.normal(kx, (channels, batch), jnp.float32)   # (C, B)

    p = density_estimator_forward(x_cb, Hs, bs, as_)
    p = jax.block_until_ready(p)

    # Verify against the PyTorch-layout reference (transpose only in the test).
    x_bc1 = jnp.transpose(x_cb)[:, :, None]                        # (B, C, 1)
    p_ref = jnp.transpose(reference_forward(x_bc1, Hs, bs, as_)[:, :, 0])  # (C, B)

    assert p.shape == (channels, batch)
    assert jnp.allclose(p, p_ref, atol=1e-5, rtol=1e-5), "mismatch vs JAX reference"

    print("KERNEL_OK")
</pallas_src>

<mosaic_0001>
module attributes {stable_mosaic.version = 11 : i64} {
  func.func @_density_kernel(%arg0: i32, %arg1: i32, %arg2: memref<8x256xf32, #tpu.memory_space<vmem>>, %arg3: memref<8x47xf32, #tpu.memory_space<vmem>>, %arg4: memref<8x256xf32, #tpu.memory_space<vmem>>) attributes {dimension_semantics = [#tpu.dimension_semantics<parallel>, #tpu.dimension_semantics<parallel>], iteration_bounds = array<i64: 1, 2>, scalar_prefetch = 0 : i64, scratch_operands = 0 : i64, tpu.core_type = #tpu.core_type<tc>, window_params = [{transform_indices = @transform_0, window_bounds = array<i64: 8, 256>}, {transform_indices = @transform_1, window_bounds = array<i64: 8, 47>}, {transform_indices = @transform_2, window_bounds = array<i64: 8, 256>}]} {
    %c0 = arith.constant 0 : index
    %c0_0 = arith.constant 0 : index
    %0 = vector.load %arg2[%c0, %c0_0] : memref<8x256xf32, #tpu.memory_space<vmem>>, vector<8x256xf32>
    %c0_1 = arith.constant 0 : index
    %c0_2 = arith.constant 0 : index
    %1 = vector.load %arg3[%c0_1, %c0_2] : memref<8x47xf32, #tpu.memory_space<vmem>>, vector<8x47xf32>
    %2 = vector.extract_strided_slice %1 {offsets = [0, 0], sizes = [8, 1], strides = [1, 1]} : vector<8x47xf32> to vector<8x1xf32>
    %3 = vector.broadcast %2 : vector<8x1xf32> to vector<8x256xf32>
    %4 = arith.mulf %0, %3 : vector<8x256xf32>
    %5 = vector.extract_strided_slice %1 {offsets = [0, 3], sizes = [8, 1], strides = [1, 1]} : vector<8x47xf32> to vector<8x1xf32>
    %6 = vector.broadcast %5 : vector<8x1xf32> to vector<8x256xf32>
    %7 = arith.addf %4, %6 : vector<8x256xf32>
    %8 = vector.extract_strided_slice %1 {offsets = [0, 6], sizes = [8, 1], strides = [1, 1]} : vector<8x47xf32> to vector<8x1xf32>
    %9 = vector.broadcast %8 : vector<8x1xf32> to vector<8x256xf32>
    %10 = arith.addf %4, %9 : vector<8x256xf32>
    %11 = vector.extract_strided_slice %1 {offsets = [0, 1], sizes = [8, 1], strides = [1, 1]} : vector<8x47xf32> to vector<8x1xf32>
    %12 = vector.broadcast %11 : vector<8x1xf32> to vector<8x256xf32>
    %13 = arith.mulf %0, %12 : vector<8x256xf32>
    %14 = vector.extract_strided_slice %1 {offsets = [0, 4], sizes = [8, 1], strides = [1, 1]} : vector<8x47xf32> to vector<8x1xf32>
    %15 = vector.broadcast %14 : vector<8x1xf32> to vector<8x256xf32>
    %16 = arith.addf %13, %15 : vector<8x256xf32>
    %17 = vector.extract_strided_slice %1 {offsets = [0, 7], sizes = [8, 1], strides = [1, 1]} : vector<8x47xf32> to vector<8x1xf32>
    %18 = vector.broadcast %17 : vector<8x1xf32> to vector<8x256xf32>
    %19 = arith.addf %13, %18 : vector<8x256xf32>
    %20 = vector.extract_strided_slice %1 {offsets = [0, 2], sizes = [8, 1], strides = [1, 1]} : vector<8x47xf32> to vector<8x1xf32>
    %21 = vector.broadcast %20 : vector<8x1xf32> to vector<8x256xf32>
    %22 = arith.mulf %0, %21 : vector<8x256xf32>
    %23 = vector.extract_strided_slice %1 {offsets = [0, 5], sizes = [8, 1], strides = [1, 1]} : vector<8x47xf32> to vector<8x1xf32>
    %24 = vector.broadcast %23 : vector<8x1xf32> to vector<8x256xf32>
    %25 = arith.addf %22, %24 : vector<8x256xf32>
    %26 = vector.extract_strided_slice %1 {offsets = [0, 8], sizes = [8, 1], strides = [1, 1]} : vector<8x47xf32> to vector<8x1xf32>
    %27 = vector.broadcast %26 : vector<8x1xf32> to vector<8x256xf32>
    %28 = arith.addf %22, %27 : vector<8x256xf32>
    %29 = vector.extract_strided_slice %1 {offsets = [0, 9], sizes = [8, 1], strides = [1, 1]} : vector<8x47xf32> to vector<8x1xf32>
    %30 = math.tanh %7 : vector<8x256xf32>
    %31 = vector.broadcast %29 : vector<8x1xf32> to vector<8x256xf32>
    %32 = arith.mulf %31, %30 : vector<8x256xf32>
    %33 = arith.addf %7, %32 : vector<8x256xf32>
    %34 = math.tanh %10 : vector<8x256xf32>
    %35 = vector.broadcast %29 : vector<8x1xf32> to vector<8x256xf32>
    %36 = arith.mulf %35, %34 : vector<8x256xf32>
    %37 = arith.addf %10, %36 : vector<8x256xf32>
    %38 = vector.extract_strided_slice %1 {offsets = [0, 10], sizes = [8, 1], strides = [1, 1]} : vector<8x47xf32> to vector<8x1xf32>
    %39 = math.tanh %16 : vector<8x256xf32>
    %40 = vector.broadcast %38 : vector<8x1xf32> to vector<8x256xf32>
    %41 = arith.mulf %40, %39 : vector<8x256xf32>
    %42 = arith.addf %16, %41 : vector<8x256xf32>
    %43 = math.tanh %19 : vector<8x256xf32>
    %44 = vector.broadcast %38 : vector<8x1xf32> to vector<8x256xf32>
    %45 = arith.mulf %44, %43 : vector<8x256xf32>
    %46 = arith.addf %19, %45 : vector<8x256xf32>
    %47 = vector.extract_strided_slice %1 {offsets = [0, 11], sizes = [8, 1], strides = [1, 1]} : vector<8x47xf32> to vector<8x1xf32>
    %48 = math.tanh %25 : vector<8x256xf32>
    %49 = vector.broadcast %47 : vector<8x1xf32> to vector<8x256xf32>
    %50 = arith.mulf %49, %48 : vector<8x256xf32>
    %51 = arith.addf %25, %50 : vector<8x256xf32>
    %52 = math.tanh %28 : vector<8x256xf32>
    %53 = vector.broadcast %47 : vector<8x1xf32> to vector<8x256xf32>
    %54 = arith.mulf %53, %52 : vector<8x256xf32>
    %55 = arith.addf %28, %54 : vector<8x256xf32>
    %56 = vector.extract_strided_slice %1 {offsets = [0, 24], sizes = [8, 1], strides = [1, 1]} : vector<8x47xf32> to vector<8x1xf32>
    %57 = vector.extract_strided_slice %1 {offsets = [0, 12], sizes = [8, 1], strides = [1, 1]} : vector<8x47xf32> to vector<8x1xf32>
    %58 = vector.broadcast %57 : vector<8x1xf32> to vector<8x256xf32>
    %59 = arith.mulf %33, %58 : vector<8x256xf32>
    %60 = vector.broadcast %56 : vector<8x1xf32> to vector<8x256xf32>
    %61 = arith.addf %60, %59 : vector<8x256xf32>
    %62 = vector.broadcast %57 : vector<8x1xf32> to vector<8x256xf32>
    %63 = arith.mulf %37, %62 : vector<8x256xf32>
    %64 = vector.broadcast %56 : vector<8x1xf32> to vector<8x256xf32>
    %65 = arith.addf %64, %63 : vector<8x256xf32>
    %66 = vector.extract_strided_slice %1 {offsets = [0, 16], sizes = [8, 1], strides = [1, 1]} : vector<8x47xf32> to vector<8x1xf32>
    %67 = vector.broadcast %66 : vector<8x1xf32> to vector<8x256xf32>
    %68 = arith.mulf %42, %67 : vector<8x256xf32>
    %69 = arith.addf %61, %68 : vector<8x256xf32>
    %70 = vector.broadcast %66 : vector<8x1xf32> to vector<8x256xf32>
    %71 = arith.mulf %46, %70 : vector<8x256xf32>
    %72 = arith.addf %65, %71 : vector<8x256xf32>
    %73 = vector.extract_strided_slice %1 {offsets = [0, 20], sizes = [8, 1], strides = [1, 1]} : vector<8x47xf32> to vector<8x1xf32>
    %74 = vector.broadcast %73 : vector<8x1xf32> to vector<8x256xf32>
    %75 = arith.mulf %51, %74 : vector<8x256xf32>
    %76 = arith.addf %69, %75 : vector<8x256xf32>
    %77 = vector.broadcast %73 : vector<8x1xf32> to vector<8x256xf32>
    %78 = arith.mulf %55, %77 : vector<8x256xf32>
    %79 = arith.addf %72, %78 : vector<8x256xf32>
    %80 = vector.extract_strided_slice %1 {offsets = [0, 25], sizes = [8, 1], strides = [1, 1]} : vector<8x47xf32> to vector<8x1xf32>
    %81 = vector.extract_strided_slice %1 {offsets = [0, 13], sizes = [8, 1], strides = [1, 1]} : vector<8x47xf32> to vector<8x1xf32>
    %82 = vector.broadcast %81 : vector<8x1xf32> to vector<8x256xf32>
    %83 = arith.mulf %33, %82 : vector<8x256xf32>
    %84 = vector.broadcast %80 : vector<8x1xf32> to vector<8x256xf32>
    %85 = arith.addf %84, %83 : vector<8x256xf32>
    %86 = vector.broadcast %81 : vector<8x1xf32> to vector<8x256xf32>
    %87 = arith.mulf %37, %86 : vector<8x256xf32>
    %88 = vector.broadcast %80 : vector<8x1xf32> to vector<8x256xf32>
    %89 = arith.addf %88, %87 : vector<8x256xf32>
    %90 = vector.extract_strided_slice %1 {offsets = [0, 17], sizes = [8, 1], strides = [1, 1]} : vector<8x47xf32> to vector<8x1xf32>
    %91 = vector.broadcast %90 : vector<8x1xf32> to vector<8x256xf32>
    %92 = arith.mulf %42, %91 : vector<8x256xf32>
    %93 = arith.addf %85, %92 : vector<8x256xf32>
    %94 = vector.broadcast %90 : vector<8x1xf32> to vector<8x256xf32>
    %95 = arith.mulf %46, %94 : vector<8x256xf32>
    %96 = arith.addf %89, %95 : vector<8x256xf32>
    %97 = vector.extract_strided_slice %1 {offsets = [0, 21], sizes = [8, 1], strides = [1, 1]} : vector<8x47xf32> to vector<8x1xf32>
    %98 = vector.broadcast %97 : vector<8x1xf32> to vector<8x256xf32>
    %99 = arith.mulf %51, %98 : vector<8x256xf32>
    %100 = arith.addf %93, %99 : vector<8x256xf32>
    %101 = vector.broadcast %97 : vector<8x1xf32> to vector<8x256xf32>
    %102 = arith.mulf %55, %101 : vector<8x256xf32>
    %103 = arith.addf %96, %102 : vector<8x256xf32>
    %104 = vector.extract_strided_slice %1 {offsets = [0, 26], sizes = [8, 1], strides = [1, 1]} : vector<8x47xf32> to vector<8x1xf32>
    %105 = vector.extract_strided_slice %1 {offsets = [0, 14], sizes = [8, 1], strides = [1, 1]} : vector<8x47xf32> to vector<8x1xf32>
    %106 = vector.broadcast %105 : vector<8x1xf32> to vector<8x256xf32>
    %107 = arith.mulf %33, %106 : vector<8x256xf32>
    %108 = vector.broadcast %104 : vector<8x1xf32> to vector<8x256xf32>
    %109 = arith.addf %108, %107 : vector<8x256xf32>
    %110 = vector.broadcast %105 : vector<8x1xf32> to vector<8x256xf32>
    %111 = arith.mulf %37, %110 : vector<8x256xf32>
    %112 = vector.broadcast %104 : vector<8x1xf32> to vector<8x256xf32>
    %113 = arith.addf %112, %111 : vector<8x256xf32>
    %114 = vector.extract_strided_slice %1 {offsets = [0, 18], sizes = [8, 1], strides = [1, 1]} : vector<8x47xf32> to vector<8x1xf32>
    %115 = vector.broadcast %114 : vector<8x1xf32> to vector<8x256xf32>
    %116 = arith.mulf %42, %115 : vector<8x256xf32>
    %117 = arith.addf %109, %116 : vector<8x256xf32>
    %118 = vector.broadcast %114 : vector<8x1xf32> to vector<8x256xf32>
    %119 = arith.mulf %46, %118 : vector<8x256xf32>
    %120 = arith.addf %113, %119 : vector<8x256xf32>
    %121 = vector.extract_strided_slice %1 {offsets = [0, 22], sizes = [8, 1], strides = [1, 1]} : vector<8x47xf32> to vector<8x1xf32>
    %122 = vector.broadcast %121 : vector<8x1xf32> to vector<8x256xf32>
    %123 = arith.mulf %51, %122 : vector<8x256xf32>
    %124 = arith.addf %117, %123 : vector<8x256xf32>
    %125 = vector.broadcast %121 : vector<8x1xf32> to vector<8x256xf32>
    %126 = arith.mulf %55, %125 : vector<8x256xf32>
    %127 = arith.addf %120, %126 : vector<8x256xf32>
    %128 = vector.extract_strided_slice %1 {offsets = [0, 27], sizes = [8, 1], strides = [1, 1]} : vector<8x47xf32> to vector<8x1xf32>
    %129 = vector.extract_strided_slice %1 {offsets = [0, 15], sizes = [8, 1], strides = [1, 1]} : vector<8x47xf32> to vector<8x1xf32>
    %130 = vector.broadcast %129 : vector<8x1xf32> to vector<8x256xf32>
    %131 = arith.mulf %33, %130 : vector<8x256xf32>
    %132 = vector.broadcast %128 : vector<8x1xf32> to vector<8x256xf32>
    %133 = arith.addf %132, %131 : vector<8x256xf32>
    %134 = vector.broadcast %129 : vector<8x1xf32> to vector<8x256xf32>
    %135 = arith.mulf %37, %134 : vector<8x256xf32>
    %136 = vector.broadcast %128 : vector<8x1xf32> to vector<8x256xf32>
    %137 = arith.addf %136, %135 : vector<8x256xf32>
    %138 = vector.extract_strided_slice %1 {offsets = [0, 19], sizes = [8, 1], strides = [1, 1]} : vector<8x47xf32> to vector<8x1xf32>
    %139 = vector.broadcast %138 : vector<8x1xf32> to vector<8x256xf32>
    %140 = arith.mulf %42, %139 : vector<8x256xf32>
    %141 = arith.addf %133, %140 : vector<8x256xf32>
    %142 = vector.broadcast %138 : vector<8x1xf32> to vector<8x256xf32>
    %143 = arith.mulf %46, %142 : vector<8x256xf32>
    %144 = arith.addf %137, %143 : vector<8x256xf32>
    %145 = vector.extract_strided_slice %1 {offsets = [0, 23], sizes = [8, 1], strides = [1, 1]} : vector<8x47xf32> to vector<8x1xf32>
    %146 = vector.broadcast %145 : vector<8x1xf32> to vector<8x256xf32>
    %147 = arith.mulf %51, %146 : vector<8x256xf32>
    %148 = arith.addf %141, %147 : vector<8x256xf32>
    %149 = vector.broadcast %145 : vector<8x1xf32> to vector<8x256xf32>
    %150 = arith.mulf %55, %149 : vector<8x256xf32>
    %151 = arith.addf %144, %150 : vector<8x256xf32>
    %152 = vector.extract_strided_slice %1 {offsets = [0, 28], sizes = [8, 1], strides = [1, 1]} : vector<8x47xf32> to vector<8x1xf32>
    %153 = math.tanh %76 : vector<8x256xf32>
    %154 = vector.broadcast %152 : vector<8x1xf32> to vector<8x256xf32>
    %155 = arith.mulf %154, %153 : vector<8x256xf32>
    %156 = arith.addf %76, %155 : vector<8x256xf32>
    %157 = math.tanh %79 : vector<8x256xf32>
    %158 = vector.broadcast %152 : vector<8x1xf32> to vector<8x256xf32>
    %159 = arith.mulf %158, %157 : vector<8x256xf32>
    %160 = arith.addf %79, %159 : vector<8x256xf32>
    %161 = vector.extract_strided_slice %1 {offsets = [0, 29], sizes = [8, 1], strides = [1, 1]} : vector<8x47xf32> to vector<8x1xf32>
    %162 = math.tanh %100 : vector<8x256xf32>
    %163 = vector.broadcast %161 : vector<8x1xf32> to vector<8x256xf32>
    %164 = arith.mulf %163, %162 : vector<8x256xf32>
    %165 = arith.addf %100, %164 : vector<8x256xf32>
    %166 = math.tanh %103 : vector<8x256xf32>
    %167 = vector.broadcast %161 : vector<8x1xf32> to vector<8x256xf32>
    %168 = arith.mulf %167, %166 : vector<8x256xf32>
    %169 = arith.addf %103, %168 : vector<8x256xf32>
    %170 = vector.extract_strided_slice %1 {offsets = [0, 30], sizes = [8, 1], strides = [1, 1]} : vector<8x47xf32> to vector<8x1xf32>
    %171 = math.tanh %124 : vector<8x256xf32>
    %172 = vector.broadcast %170 : vector<8x1xf32> to vector<8x256xf32>
    %173 = arith.mulf %172, %171 : vector<8x256xf32>
    %174 = arith.addf %124, %173 : vector<8x256xf32>
    %175 = math.tanh %127 : vector<8x256xf32>
    %176 = vector.broadcast %170 : vector<8x1xf32> to vector<8x256xf32>
    %177 = arith.mulf %176, %175 : vector<8x256xf32>
    %178 = arith.addf %127, %177 : vector<8x256xf32>
    %179 = vector.extract_strided_slice %1 {offsets = [0, 31], sizes = [8, 1], strides = [1, 1]} : vector<8x47xf32> to vector<8x1xf32>
    %180 = math.tanh %148 : vector<8x256xf32>
    %181 = vector.broadcast %179 : vector<8x1xf32> to vector<8x256xf32>
    %182 = arith.mulf %181, %180 : vector<8x256xf32>
    %183 = arith.addf %148, %182 : vector<8x256xf32>
    %184 = math.tanh %151 : vector<8x256xf32>
    %185 = vector.broadcast %179 : vector<8x1xf32> to vector<8x256xf32>
    %186 = arith.mulf %185, %184 : vector<8x256xf32>
    %187 = arith.addf %151, %186 : vector<8x256xf32>
    %188 = vector.extract_strided_slice %1 {offsets = [0, 40], sizes = [8, 1], strides = [1, 1]} : vector<8x47xf32> to vector<8x1xf32>
    %189 = vector.extract_strided_slice %1 {offsets = [0, 32], sizes = [8, 1], strides = [1, 1]} : vector<8x47xf32> to vector<8x1xf32>
    %190 = vector.broadcast %189 : vector<8x1xf32> to vector<8x256xf32>
    %191 = arith.mulf %156, %190 : vector<8x256xf32>
    %192 = vector.broadcast %188 : vector<8x1xf32> to vector<8x256xf32>
    %193 = arith.addf %192, %191 : vector<8x256xf32>
    %194 = vector.broadcast %189 : vector<8x1xf32> to vector<8x256xf32>
    %195 = arith.mulf %160, %194 : vector<8x256xf32>
    %196 = vector.broadcast %188 : vector<8x1xf32> to vector<8x256xf32>
    %197 = arith.addf %196, %195 : vector<8x256xf32>
    %198 = vector.extract_strided_slice %1 {offsets = [0, 34], sizes = [8, 1], strides = [1, 1]} : vector<8x47xf32> to vector<8x1xf32>
    %199 = vector.broadcast %198 : vector<8x1xf32> to vector<8x256xf32>
    %200 = arith.mulf %165, %199 : vector<8x256xf32>
    %201 = arith.addf %193, %200 : vector<8x256xf32>
    %202 = vector.broadcast %198 : vector<8x1xf32> to vector<8x256xf32>
    %203 = arith.mulf %169, %202 : vector<8x256xf32>
    %204 = arith.addf %197, %203 : vector<8x256xf32>
    %205 = vector.extract_strided_slice %1 {offsets = [0, 36], sizes = [8, 1], strides = [1, 1]} : vector<8x47xf32> to vector<8x1xf32>
    %206 = vector.broadcast %205 : vector<8x1xf32> to vector<8x256xf32>
    %207 = arith.mulf %174, %206 : vector<8x256xf32>
    %208 = arith.addf %201, %207 : vector<8x256xf32>
    %209 = vector.broadcast %205 : vector<8x1xf32> to vector<8x256xf32>
    %210 = arith.mulf %178, %209 : vector<8x256xf32>
    %211 = arith.addf %204, %210 : vector<8x256xf32>
    %212 = vector.extract_strided_slice %1 {offsets = [0, 38], sizes = [8, 1], strides = [1, 1]} : vector<8x47xf32> to vector<8x1xf32>
    %213 = vector.broadcast %212 : vector<8x1xf32> to vector<8x256xf32>
    %214 = arith.mulf %183, %213 : vector<8x256xf32>
    %215 = arith.addf %208, %214 : vector<8x256xf32>
    %216 = vector.broadcast %212 : vector<8x1xf32> to vector<8x256xf32>
    %217 = arith.mulf %187, %216 : vector<8x256xf32>
    %218 = arith.addf %211, %217 : vector<8x256xf32>
    %219 = vector.extract_strided_slice %1 {offsets = [0, 41], sizes = [8, 1], strides = [1, 1]} : vector<8x47xf32> to vector<8x1xf32>
    %220 = vector.extract_strided_slice %1 {offsets = [0, 33], sizes = [8, 1], strides = [1, 1]} : vector<8x47xf32> to vector<8x1xf32>
    %221 = vector.broadcast %220 : vector<8x1xf32> to vector<8x256xf32>
    %222 = arith.mulf %156, %221 : vector<8x256xf32>
    %223 = vector.broadcast %219 : vector<8x1xf32> to vector<8x256xf32>
    %224 = arith.addf %223, %222 : vector<8x256xf32>
    %225 = vector.broadcast %220 : vector<8x1xf32> to vector<8x256xf32>
    %226 = arith.mulf %160, %225 : vector<8x256xf32>
    %227 = vector.broadcast %219 : vector<8x1xf32> to vector<8x256xf32>
    %228 = arith.addf %227, %226 : vector<8x256xf32>
    %229 = vector.extract_strided_slice %1 {offsets = [0, 35], sizes = [8, 1], strides = [1, 1]} : vector<8x47xf32> to vector<8x1xf32>
    %230 = vector.broadcast %229 : vector<8x1xf32> to vector<8x256xf32>
    %231 = arith.mulf %165, %230 : vector<8x256xf32>
    %232 = arith.addf %224, %231 : vector<8x256xf32>
    %233 = vector.broadcast %229 : vector<8x1xf32> to vector<8x256xf32>
    %234 = arith.mulf %169, %233 : vector<8x256xf32>
    %235 = arith.addf %228, %234 : vector<8x256xf32>
    %236 = vector.extract_strided_slice %1 {offsets = [0, 37], sizes = [8, 1], strides = [1, 1]} : vector<8x47xf32> to vector<8x1xf32>
    %237 = vector.broadcast %236 : vector<8x1xf32> to vector<8x256xf32>
    %238 = arith.mulf %174, %237 : vector<8x256xf32>
    %239 = arith.addf %232, %238 : vector<8x256xf32>
    %240 = vector.broadcast %236 : vector<8x1xf32> to vector<8x256xf32>
    %241 = arith.mulf %178, %240 : vector<8x256xf32>
    %242 = arith.addf %235, %241 : vector<8x256xf32>
    %243 = vector.extract_strided_slice %1 {offsets = [0, 39], sizes = [8, 1], strides = [1, 1]} : vector<8x47xf32> to vector<8x1xf32>
    %244 = vector.broadcast %243 : vector<8x1xf32> to vector<8x256xf32>
    %245 = arith.mulf %183, %244 : vector<8x256xf32>
    %246 = arith.addf %239, %245 : vector<8x256xf32>
    %247 = vector.broadcast %243 : vector<8x1xf32> to vector<8x256xf32>
    %248 = arith.mulf %187, %247 : vector<8x256xf32>
    %249 = arith.addf %242, %248 : vector<8x256xf32>
    %250 = vector.extract_strided_slice %1 {offsets = [0, 42], sizes = [8, 1], strides = [1, 1]} : vector<8x47xf32> to vector<8x1xf32>
    %251 = math.tanh %215 : vector<8x256xf32>
    %252 = vector.broadcast %250 : vector<8x1xf32> to vector<8x256xf32>
    %253 = arith.mulf %252, %251 : vector<8x256xf32>
    %254 = arith.addf %215, %253 : vector<8x256xf32>
    %255 = math.tanh %218 : vector<8x256xf32>
    %256 = vector.broadcast %250 : vector<8x1xf32> to vector<8x256xf32>
    %257 = arith.mulf %256, %255 : vector<8x256xf32>
    %258 = arith.addf %218, %257 : vector<8x256xf32>
    %259 = vector.extract_strided_slice %1 {offsets = [0, 43], sizes = [8, 1], strides = [1, 1]} : vector<8x47xf32> to vector<8x1xf32>
    %260 = math.tanh %246 : vector<8x256xf32>
    %261 = vector.broadcast %259 : vector<8x1xf32> to vector<8x256xf32>
    %262 = arith.mulf %261, %260 : vector<8x256xf32>
    %263 = arith.addf %246, %262 : vector<8x256xf32>
    %264 = math.tanh %249 : vector<8x256xf32>
    %265 = vector.broadcast %259 : vector<8x1xf32> to vector<8x256xf32>
    %266 = arith.mulf %265, %264 : vector<8x256xf32>
    %267 = arith.addf %249, %266 : vector<8x256xf32>
    %268 = vector.extract_strided_slice %1 {offsets = [0, 46], sizes = [8, 1], strides = [1, 1]} : vector<8x47xf32> to vector<8x1xf32>
    %269 = vector.extract_strided_slice %1 {offsets = [0, 44], sizes = [8, 1], strides = [1, 1]} : vector<8x47xf32> to vector<8x1xf32>
    %270 = vector.broadcast %269 : vector<8x1xf32> to vector<8x256xf32>
    %271 = arith.mulf %254, %270 : vector<8x256xf32>
    %272 = vector.broadcast %268 : vector<8x1xf32> to vector<8x256xf32>
    %273 = arith.addf %272, %271 : vector<8x256xf32>
    %274 = vector.broadcast %269 : vector<8x1xf32> to vector<8x256xf32>
    %275 = arith.mulf %258, %274 : vector<8x256xf32>
    %276 = vector.broadcast %268 : vector<8x1xf32> to vector<8x256xf32>
    %277 = arith.addf %276, %275 : vector<8x256xf32>
    %278 = vector.extract_strided_slice %1 {offsets = [0, 45], sizes = [8, 1], strides = [1, 1]} : vector<8x47xf32> to vector<8x1xf32>
    %279 = vector.broadcast %278 : vector<8x1xf32> to vector<8x256xf32>
    %280 = arith.mulf %263, %279 : vector<8x256xf32>
    %281 = arith.addf %273, %280 : vector<8x256xf32>
    %282 = vector.broadcast %278 : vector<8x1xf32> to vector<8x256xf32>
    %283 = arith.mulf %267, %282 : vector<8x256xf32>
    %284 = arith.addf %277, %283 : vector<8x256xf32>
    %285 = arith.negf %281 : vector<8x256xf32>
    %286 = math.exp %285 : vector<8x256xf32>
    %cst = arith.constant 1.000000e+00 : f32
    %287 = vector.broadcast %cst : f32 to vector<8x256xf32>
    %288 = arith.addf %287, %286 : vector<8x256xf32>
    %289 = arith.divf %287, %288 : vector<8x256xf32>
    %290 = arith.negf %284 : vector<8x256xf32>
    %291 = math.exp %290 : vector<8x256xf32>
    %cst_3 = arith.constant 1.000000e+00 : f32
    %292 = vector.broadcast %cst_3 : f32 to vector<8x256xf32>
    %293 = arith.addf %292, %291 : vector<8x256xf32>
    %294 = arith.divf %292, %293 : vector<8x256xf32>
    %295 = arith.subf %289, %294 : vector<8x256xf32>
    %c0_4 = arith.constant 0 : index
    %c0_5 = arith.constant 0 : index
    %296 = vector.load %arg4[%c0_4, %c0_5] : memref<8x256xf32, #tpu.memory_space<vmem>>, vector<8x256xf32>
    tpu.vector_store %arg4[%c0_4, %c0_5], %295 {strides = array<i32>} : memref<8x256xf32, #tpu.memory_space<vmem>>, vector<8x256xf32>,
    return
  }
  func.func @transform_0(%arg0: i32, %arg1: i32) -> (i32, i32) {
    %c0_i32 = arith.constant 0 : i32
    return %arg0, %arg1 : i32, i32
  }
  func.func @transform_1(%arg0: i32, %arg1: i32) -> (i32, i32) {
    %c0_i32 = arith.constant 0 : i32
    %c0_i32_0 = arith.constant 0 : i32
    return %arg0, %c0_i32 : i32, i32
  }
  func.func @transform_2(%arg0: i32, %arg1: i32) -> (i32, i32) {
    %c0_i32 = arith.constant 0 : i32
    return %arg0, %arg1 : i32, i32
  }
}

</mosaic_0001>

<bundles_post_ra>
// kernel: tpu_custom_call.1
= control target key start
LH: loop header
LB: loop body
LE: loop exit
PB: predicated region body
PF: predicated region fallthrough
CT: control target
= control target key end

     0   :  { %7 = vsyncpa [#allocation3], 0  ;;  %s1785_s0 = inlined_call_operand.hbm [shape: f32[8,512], index: 0, kind: input, shape index: {}]   ;;  %s1786_s1 = inlined_call_operand.hbm [shape: f32[8,47], index: 1, kind: input, shape index: {}]   ;;  %s1787_s2 = inlined_call_operand.hbm [shape: f32[8,512], index: 2, kind: output, shape index: {}]  }
   0x1   :  { %9 = vsyncpa [#allocation3 + $0x1], 0 }
   0x2   :  { %10 = vsyncpa [#allocation6], 0 }
   0x3   :  { %11 = vsyncpa [#allocation4], 0 }
   0x4   :  { %13 = vsyncpa [#allocation4 + $0x1], 0  ;;  %s1319_s9 = smov 0   ;;  %s1321_s10 = smov 0  }
   0x5   :  { %s1323_s11 = smov 0   ;;  %s1325_s12 = smov 0  }
   0x6   :  { %s1327_s13 = smov 0   ;;  %s1329_s14 = smov 0  }
   0x7 LB: > { %s835_s15 = sadd.s32 4294967295, %s1252_s14   ;;  %s836_s16 = sadd.s32 4294967294, %s1252_s14   ;;  %s1252_s14 = sphi %s1329_s14, %s19_s14   ;;  %s1248_s13 = sphi %s1327_s13, %s1804_s13   ;;  %s1244_s12 = sphi %s1325_s12, %s1803_s12   ;;  %s1240_s11 = sphi %s1323_s11, %s1802_s11   ;;  %s1236_s10 = sphi %s1321_s10, %s1801_s10   ;;  %s1232_s9 = sphi %s1319_s9, %s1800_s9  }
   0x8   : > { %p53_p0 = scmp.ne.s32.totalorder %s1236_s10, %s1232_s9  ;;  %p1353_p1 = scmp.eq.s32.totalorder %s835_s15, 0 }
   0x9   : > { %p1357_p2 = scmp.eq.s32.totalorder %s835_s15, 1  ;;  %p111_p3 = scmp.eq.s32.totalorder %s836_s16, 1 }
   0xa   : > { %p1363_p4 = por %p1353_p1, %p53_p0  ;;  %p837_p5 = scmp.ge.s32.totalorder %s1252_s14, 1 }
   0xb   : > { %p1368_p6 = por %p111_p3, %p53_p0  ;;  %p118_p7 = scmp.lt.s32.totalorder %s1252_s14, 3 }
   0xc   : > { %s1791_s19 = scalar_select %p1363_p4, 1, 0 }
   0xd   : > { %s1792_s20 = scalar_select %p1368_p6, 1, 0 }
   0xe   : > { %p1373_p8 = pnand %p837_p5, %p118_p7  ;;  %s1254_s22 = smov [#allocation5]  }
   0xf   : > { %s133_s23 = sshll.u32 %s1254_s22, 4  ;;  %s28_s25 = sadd.s32 1, %s1248_s13  ;;  %s134_s23 = int_to_ptr.vmem [resolvable:$true] %s133_s23 }
  0x10   : > { %p866_p10 = pneg %p1373_p8  ;;  %s40_s26 = sadd.s32 1, %s1240_s11 }
  0x11   : > { %p29_p12 = scmp.ge.s32.totalorder %s28_s25, 2  ;;  %s1125_s27 = scalar_lea.vmem %s134_s23, 128 }
  0x12   : > { %p1382_p11 = pnand %p866_p10, %p1353_p1  ;;  %p1126_p0 = scmp.ne.s32.totalorder %s134_s23, %s1125_s27 }
  0x13   : > { %p1133_p7 = scmp.lt.s32.totalorder %s134_s23, %s134_s23  ;;  %p1134_p6 = scmp.lt.s32.totalorder %s1125_s27, %s1125_s27 }
  0x14   : > { %p1116_p13 = pneg %p1382_p11 }
  0x15   : > { %p1135_p9 = por %p1134_p6, %p1133_p7 }
  0x16   : > { %p1128_p3 = pnand %p1126_p0, %p1116_p13 }
  0x18   : > { %p1129_p5 = pneg %p1128_p3 }
  0x1a   : > { %p1136_p4 = pnand %p1135_p9, %p1129_p5 }
  0x1c   : > { %1139 = shalt.err (!%p1136_p4)
}
  0x1d   : > { %869 = dma.hbm_to_vmem [thread:$0]  (!%p1382_p11), %s1786_s1, 128, %s134_s23, [#allocation6]  }
  0x1e   : > { %s1806_s25 = smov (%p29_p12, %s28_s25), 0  ;;  %p47_p6 = scmp.ne.s32.totalorder %s1240_s11, %s1236_s10 }
  0x1f   : > { %p48_p4 = scmp.eq.s32.totalorder %s1252_s14, 0  ;;  %s36_s30 = ssub.s32 %s1248_s13, %s1806_s25 }
  0x20   : > { %p879_p9 = scmp.lt.s32.totalorder %s1252_s14, 2  ;;  %p38_p10 = scmp.eq.s32.totalorder %s36_s30, 0 }
  0x21   : > { %p49_p13 = por %p48_p4, %p47_p6  ;;  %p1405_p0 = por %p1357_p2, %p47_p6 }
  0x22   : > { %s144_s4 = sand.u32 1, %s1240_s11   ;;  %s856_s7 = sshll.u32 %s1248_s13, 8 }
  0x23   : > { %s1411_s5 = scalar_select %p38_p10, %s1240_s11, %s40_s26  }
  0x24   : > { %s840_s6 = sshll.u32 %s144_s4, 4  ;;  %s156_s16 = scalar_lea.hbm %s1785_s0, %s856_s7 }
  0x25   : > { %s148_s22 = scalar_lea.vmem [#allocation2], %s840_s6  ;;  %p1417_p11 = pnand %p879_p9, %p49_p13 }
  0x26   : > { %s158_s23 = sshll.u32 %s148_s22, 4  ;;  %s145_s18 = scalar_lea.sflag [#allocation3], %s144_s4  ;;  %s159_s23 = int_to_ptr.vmem [resolvable:$true] %s158_s23 }
  0x27   : > { %p1142_p2 = pneg %p1417_p11  ;;  %s1153_s27 = scalar_lea.vmem %s159_s23, 256 }
  0x28   : > { %p1154_p12 = scmp.ne.s32.totalorder %s159_s23, %s1153_s27  ;;  %s1255_s26 = smov [#allocation2]  }
  0x29   : > { %s1158_s28 = sshll.u32 %s1255_s26, 4  ;;  %s1159_s28 = int_to_ptr.vmem [resolvable:$false] %s1158_s28 }
  0x2a   : > { %p1156_p3 = pnand %p1154_p12, %p1142_p2  ;;  %s1160_s29 = scalar_lea.vmem %s1159_s28, 512 }
  0x2b   : > { %p1161_p7 = scmp.lt.s32.totalorder %s159_s23, %s1159_s28  ;;  %p1162_p6 = scmp.lt.s32.totalorder %s1160_s29, %s1153_s27 }
  0x2c   : > { %p1157_p5 = pneg %p1156_p3 }
  0x2d   : > { %p1163_p4 = por %p1162_p6, %p1161_p7 }
  0x2f   : > { %p1164_p10 = pnand %p1163_p4, %p1157_p5 }
  0x31   : > { %1167 = shalt.err (!%p1164_p10)
}
  0x32   : > { %873 = dma.hbm_to_vmem [thread:$0]  (!%p1417_p11), %s156_s16, 256, %s159_s23, %s145_s18  }
  0x33   : > { %167 = sbr.rel (%p1373_p8) target bundleno = 393 (0x189), region = 28  ;;  %s1428_s30 = sand.u32 (!%p1373_p8), 1, %s1236_s10  }
  0x34   : > { %s844_s4 = sshll.u32 (!%p1373_p8), %s1428_s30, 4  ;;  %s170_s6 = scalar_lea.sflag (!%p1373_p8), [#allocation3], %s1428_s30 }
  0x35   : > { %s1434_s7 = scalar_lea.vmem (!%p1373_p8), [#allocation2], %s844_s4  ;;  %p1797_p9 = scmp.ne.s32.totalorder (!%p1373_p8), %s1791_s19, 0 }
  0x38   : > { %1219 = dma.done.wait (%p1797_p9), %s170_s6, 256  }
  0x39   : > { %1221 = vsyncadd (%p1797_p9), %s170_s6, 4294967040 }
  0x3a   : > { %1223 = dma.done.wait (%p1353_p1), [#allocation6], 128  }
  0x3b   : > { %1225 = vsyncadd (%p1353_p1), [#allocation6], 4294967168  ;;  %v1256_v0 = vmov 6   ;;  %v1257_v1 = vmov 0   ;;  %v1444_v2 = vld [vmem:[#allocation5] sm:$0xff]  ;;  %v1258_v3 = vmov 1  }
  0x3c   : > { %980 = vset.pattern.permute.xlu1 %v1256_v0  ;;  %978 = vset.pattern.permute.xlu0 %v1257_v1  ;;  %v1259_v4 = vmov 3   ;;  %v1260_v5 = vmov 4   ;;  %v1261_v6 = vmov 7   ;;  %v1262_v7 = vmov 2   ;;  %v200_v56 = vld [vmem:[%s1434_s7] sm:$0xff]  ;;  %v201_v57 = vld [vmem:[%s1434_s7 + $0x8] sm:$0xff] }
  0x3d   : > { %217 = vperm.xlu1 %980, %v1444_v2   ;;  %205 = vperm.xlu0 %978, %v1444_v2   ;;  %v1263_v8 = vmov 8   ;;  %v1264_v9 = vmov 5   ;;  %v1265_v10 = vmov 11   ;;  %v1266_v11 = vmov 9   ;;  %s857_s17 = sshll.u32 %s1244_s12, 8  ;;  %s197_s19 = scalar_lea.vmem [#allocation7], %s844_s4 }
  0x3e   : > { %v1267_v12 = vmov 16   ;;  %v1268_v13 = vmov 10   ;;  %v1269_v14 = vmov 25   ;;  %v1270_v15 = vmov 12   ;;  %s739_s21 = sshll.u32 %s197_s19, 4  ;;  %s1743_s16 = scalar_lea.hbm %s1787_s2, %s857_s17  ;;  %s740_s21 = int_to_ptr.vmem [resolvable:$true] %s739_s21 }
  0x3f   : > { %v1271_v16 = vmov 21   ;;  %v1272_v17 = vmov 24   ;;  %v1273_v18 = vmov 15   ;;  %v1274_v19 = vmov 13   ;;  %s723_s22 = scalar_lea.sflag [#allocation4], %s1428_s30  ;;  %s1168_s23 = scalar_lea.vmem %s740_s21, 256 }
  0x40   : > { %v1275_v20 = vmov 19   ;;  %v1276_v21 = vmov 20   ;;  %v1277_v22 = vmov 29   ;;  %v1278_v23 = vmov 17   ;;  %p1169_p1 = scmp.ne.s32.totalorder %s740_s21, %s1168_s23  ;;  %s1303_s12 = smov [#allocation7]  }
  0x41   : > { %981 = vset.pattern.permute.xlu1 %v1258_v3  ;;  %979 = vset.pattern.permute.xlu0 %v1259_v4  ;;  %v1279_v24 = vmov 31   ;;  %v1280_v25 = vmov 14   ;;  %v1281_v26 = vmov 33   ;;  %v1282_v27 = vmov 26   ;;  %s1172_s24 = sshll.u32 %s1303_s12, 4  ;;  %s1173_s24 = int_to_ptr.vmem [resolvable:$false] %s1172_s24 }
  0x42   : > { %223 = vperm.xlu1 %981, %v1444_v2   ;;  %211 = vperm.xlu0 %979, %v1444_v2   ;;  %v1283_v28 = vmov 35   ;;  %v1284_v29 = vmov 18   ;;  %v1285_v30 = vmov 39   ;;  %v1286_v31 = vmov 22   ;;  %p1170_p8 = pnand %p1169_p1, %p1405_p0  ;;  %s1174_s18 = scalar_lea.vmem %s1173_s24, 512 }
  0x43   : > { %v1287_v32 = vmov 44   ;;  %v1288_v33 = vmov 27   ;;  %v1289_v34 = vmov 45   ;;  %v1290_v35 = vmov 23   ;;  %p1175_p11 = scmp.lt.s32.totalorder %s740_s21, %s1173_s24  ;;  %p1176_p2 = scmp.lt.s32.totalorder %s1174_s18, %s1168_s23 }
  0x44   : > { %v1291_v36 = vmov 28   ;;  %v1292_v37 = vmov 30   ;;  %v1293_v38 = vmov 32   ;;  %v1294_v39 = vmov 40   ;;  %p1171_p13 = pneg %p1170_p8 }
  0x45   : > { %v1295_v40 = vmov 34   ;;  %v1296_v41 = vmov 36   ;;  %v1297_v42 = vmov 41   ;;  %v1298_v44 = vmov 38   ;;  %p1177_p12 = por %p1176_p2, %p1175_p11 }
  0x46   : > { %982 = vset.pattern.permute.xlu1 %v1260_v5  ;;  %983 = vset.pattern.permute.xlu0 %v1261_v6  ;;  %v1299_v46 = vmov 37   ;;  %v1300_v48 = vmov 42   ;;  %v1301_v50 = vmov 43   ;;  %v1302_v52 = vmov 46  }
  0x47   : > { %229 = vperm.xlu1 %982, %v1444_v2   ;;  %235 = vperm.xlu0 %983, %v1444_v2   ;;  %p1178_p3 = pnand %p1177_p12, %p1171_p13 }
  0x4b   : > { %984 = vset.pattern.permute.xlu1 %v1262_v7  ;;  %986 = vset.pattern.permute.xlu0 %v1263_v8 }
  0x4c   : > { %241 = vperm.xlu1 %984, %v1444_v2   ;;  %253 = vperm.xlu0 %986, %v1444_v2  }
  0x50   : > { %985 = vset.pattern.permute.xlu1 %v1264_v9  ;;  %989 = vset.pattern.permute.xlu0 %v1265_v10 }
  0x51   : > { %247 = vperm.xlu1 %985, %v1444_v2   ;;  %293 = vperm.xlu0 %989, %v1444_v2  }
  0x55   : > { %987 = vset.pattern.permute.xlu1 %v1266_v11  ;;  %992 = vset.pattern.permute.xlu0 %v1267_v12 }
  0x56   : > { %261 = vperm.xlu1 %987, %v1444_v2   ;;  %323 = vperm.xlu0 %992, %v1444_v2  }
  0x5a   : > { %988 = vset.pattern.permute.xlu1 %v1268_v13  ;;  %995 = vset.pattern.permute.xlu0 %v1269_v14 }
  0x5b   : > { %277 = vperm.xlu1 %988, %v1444_v2   ;;  %353 = vperm.xlu0 %995, %v1444_v2  }
  0x5f   : > { %990 = vset.pattern.permute.xlu1 %v1270_v15  ;;  %998 = vset.pattern.permute.xlu0 %v1271_v16 }
  0x60   : > { %307 = vperm.xlu1 %990, %v1444_v2   ;;  %375 = vperm.xlu0 %998, %v1444_v2  }
  0x64   : > { %991 = vset.pattern.permute.xlu1 %v1272_v17  ;;  %1001 = vset.pattern.permute.xlu0 %v1273_v18 }
  0x65   : > { %313 = vperm.xlu1 %991, %v1444_v2   ;;  %427 = vperm.xlu0 %1001, %v1444_v2  }
  0x69   : > { %993 = vset.pattern.permute.xlu1 %v1274_v19  ;;  %1004 = vset.pattern.permute.xlu0 %v1275_v20 }
  0x6a   : > { %347 = vperm.xlu1 %993, %v1444_v2   ;;  %443 = vperm.xlu0 %1004, %v1444_v2  }
  0x6e   : > { %994 = vset.pattern.permute.xlu1 %v1276_v21  ;;  %1007 = vset.pattern.permute.xlu0 %v1277_v22 }
  0x6f   : > { %335 = vperm.xlu1 %994, %v1444_v2   ;;  %485 = vperm.xlu0 %1007, %v1444_v2  }
  0x73   : > { %996 = vset.pattern.permute.xlu1 %v1278_v23  ;;  %1010 = vset.pattern.permute.xlu0 %v1279_v24 }
  0x74   : > { %363 = vperm.xlu1 %996, %v1444_v2   ;;  %517 = vperm.xlu0 %1010, %v1444_v2  }
  0x78   : > { %997 = vset.pattern.permute.xlu1 %v1280_v25  ;;  %1013 = vset.pattern.permute.xlu0 %v1281_v26 }
  0x79   : > { %387 = vperm.xlu1 %997, %v1444_v2   ;;  %583 = vperm.xlu0 %1013, %v1444_v2  }
  0x7d   : > { %999 = vset.pattern.permute.xlu1 %v1282_v27  ;;  %1016 = vset.pattern.permute.xlu0 %v1283_v28 }
  0x7e   : > { %393 = vperm.xlu1 %999, %v1444_v2   ;;  %599 = vperm.xlu0 %1016, %v1444_v2  }
  0x82   : > { %1000 = vset.pattern.permute.xlu1 %v1284_v29  ;;  %1019 = vset.pattern.permute.xlu0 %v1285_v30 }
  0x83   : > { %403 = vperm.xlu1 %1000, %v1444_v2   ;;  %623 = vperm.xlu0 %1019, %v1444_v2  }
  0x87   : > { %1002 = vset.pattern.permute.xlu1 %v1286_v31  ;;  %1022 = vset.pattern.permute.xlu0 %v1287_v32 }
  0x88   : > { %415 = vperm.xlu1 %1002, %v1444_v2   ;;  %667 = vperm.xlu0 %1022, %v1444_v2  }
  0x8c   : > { %1003 = vset.pattern.permute.xlu1 %v1288_v33  ;;  %1025 = vset.pattern.permute.xlu0 %v1289_v34 }
  0x8d   : > { %433 = vperm.xlu1 %1003, %v1444_v2  }
  0x91   : > { %1005 = vset.pattern.permute.xlu1 %v1290_v35 }
  0x92   : > { %455 = vperm.xlu1 %1005, %v1444_v2  }
  0x96   : > { %1006 = vset.pattern.permute.xlu1 %v1291_v36 }
  0x97   : > { %469 = vperm.xlu1 %1006, %v1444_v2  }
  0x9b   : > { %1008 = vset.pattern.permute.xlu1 %v1292_v37 }
  0x9c   : > { %501 = vperm.xlu1 %1008, %v1444_v2  }
  0xa0   : > { %1009 = vset.pattern.permute.xlu1 %v1293_v38 }
  0xa1   : > { %531 = vperm.xlu1 %1009, %v1444_v2  }
  0xa5   : > { %1011 = vset.pattern.permute.xlu1 %v1294_v39 }
  0xa6   : > { %537 = vperm.xlu1 %1011, %v1444_v2  }
  0xaa   : > { %1012 = vset.pattern.permute.xlu1 %v1295_v40 }
  0xab   : > { %547 = vperm.xlu1 %1012, %v1444_v2  }
  0xaf   : > { %1014 = vset.pattern.permute.xlu1 %v1296_v41 }
  0xb0   : > { %559 = vperm.xlu1 %1014, %v1444_v2  }
  0xb4   : > { %1015 = vset.pattern.permute.xlu1 %v1297_v42 }
  0xb5   : > { %589 = vperm.xlu1 %1015, %v1444_v2  }
  0xb8   : > { %v218_v43 = vpop.permute.xlu1 %217  ;;  %v206_v54 = vpop.permute.xlu0 %205 }
  0xb9   : > { %1017 = vset.pattern.permute.xlu1 %v1298_v44  ;;  %v208_v59 = vmul.f32 %v206_v54, %v200_v56  ;;  %v209_v60 = vmul.f32 %v206_v54, %v201_v57 }
  0xba   : > { %571 = vperm.xlu1 %1017, %v1444_v2  }
  0xbb   : > { %v1501_v62 = vadd.f32 %v218_v43, %v208_v59  ;;  %v1503_v0 = vadd.f32 %v218_v43, %v209_v60 }
  0xbd   : > { %v224_v45 = vpop.permute.xlu1 %223  ;;  %v212_v58 = vpop.permute.xlu0 %211  ;;  %1026 = vtanh.f32 %v1501_v62 }
  0xbe   : > { %1018 = vset.pattern.permute.xlu1 %v1299_v46  ;;  %v226_v1 = vmul.f32 %v224_v45, %v200_v56  ;;  %v1505_v3 = vadd.f32 %v212_v58, %v208_v59  ;;  %v215_v5 = vadd.f32 %v212_v58, %v209_v60  ;;  %1028 = vtanh.f32 %v1503_v0 }
  0xbf   : > { %611 = vperm.xlu1 %1018, %v1444_v2  }
  0xc0   : > { %1030 = vtanh.f32 %v1505_v3 }
  0xc1   : > { %1032 = vtanh.f32 %v215_v5 }
  0xc2   : > { %v230_v47 = vpop.permute.xlu1 %229  ;;  %v236_v63 = vpop.permute.xlu0 %235 }
  0xc3   : > { %1020 = vset.pattern.permute.xlu1 %v1300_v48  ;;  %v232_v7 = vadd.f32 %v230_v47, %v226_v1  ;;  %v238_v11 = vadd.f32 %v236_v63, %v226_v1 }
  0xc4   : > { %637 = vperm.xlu1 %1020, %v1444_v2  }
  0xc5   : > { %1034 = vtanh.f32 %v232_v7 }
  0xc7   : > { %v242_v49 = vpop.permute.xlu1 %241  ;;  %v254_v9 = vpop.permute.xlu0 %253 }
  0xc8   : > { %1021 = vset.pattern.permute.xlu1 %v1301_v50  ;;  %v244_v6 = vmul.f32 %v242_v49, %v200_v56  ;;  %v245_v8 = vmul.f32 %v242_v49, %v201_v57 }
  0xc9   : > { %653 = vperm.xlu1 %1021, %v1444_v2  }
  0xca   : > { %v256_v12 = vadd.f32 %v254_v9, %v244_v6  ;;  %v257_v14 = vadd.f32 %v254_v9, %v245_v8  ;;  %v1027_v20 = vpop.eup %1026 }
  0xcb   : > { %v1029_v22 = vpop.eup %1028 }
  0xcc   : > { %v248_v51 = vpop.permute.xlu1 %247  ;;  %v294_v19 = vpop.permute.xlu0 %293 }
  0xcd   : > { %1023 = vset.pattern.permute.xlu1 %v1302_v52  ;;  %v250_v15 = vadd.f32 %v248_v51, %v244_v6  ;;  %v251_v17 = vadd.f32 %v248_v51, %v245_v8  ;;  %v1031_v23 = vpop.eup %1030 }
  0xce   : > { %673 = vperm.xlu1 %1023, %v1444_v2   ;;  %v1033_v25 = vpop.eup %1032 }
  0xd1   : > { %v1492_v53 = vpop.permute.xlu1 %261  ;;  %v324_v24 = vpop.permute.xlu0 %323 }
  0xd2   : > { %1024 = vset.pattern.permute.xlu1 %v1289_v34  ;;  %v1035_v26 = vpop.eup %1034  ;;  %v264_v41 = vmul.f32 %v1031_v23, %v1492_v53  ;;  %v265_v42 = vmul.f32 %v1033_v25, %v1492_v53  ;;  %v270_v46 = vmul.f32 %v1027_v20, %v1492_v53 }
  0xd3   : > { %683 = vperm.xlu1 %1024, %v1444_v2   ;;  %v227_v2 = vmul.f32 %v224_v45, %v201_v57 }
  0xd4   : > { %v1541_v56 = vadd.f32 %v264_v41, %v1505_v3  ;;  %v1554_v60 = vadd.f32 %v270_v46, %v1501_v62 }
  0xd5   : > { %v233_v10 = vadd.f32 %v230_v47, %v227_v2  ;;  %v239_v16 = vadd.f32 %v236_v63, %v227_v2  ;;  %v271_v47 = vmul.f32 %v1029_v22, %v1492_v53 }
  0xd6   : > { %v1495_v55 = vpop.permute.xlu1 %277  ;;  %v1520_v32 = vpop.permute.xlu0 %353 }
  0xd7   : > { %1036 = vtanh.f32 %v233_v10  ;;  %v280_v34 = vmul.f32 %v1035_v26, %v1495_v55  ;;  %v1557_v63 = vadd.f32 %v271_v47, %v1503_v0 }
  0xd8   : > { %1038 = vtanh.f32 %v238_v11 }
  0xd9   : > { %1040 = vtanh.f32 %v256_v12  ;;  %v1532_v48 = vadd.f32 %v280_v34, %v232_v7 }
  0xda   : > { %1042 = vtanh.f32 %v257_v14 }
  0xdb   : > { %v1499_v61 = vpop.permute.xlu1 %307  ;;  %1044 = vtanh.f32 %v250_v15  ;;  %v376_v52 = vpop.permute.xlu0 %375  ;;  %v326_v3 = vmul.f32 %v324_v24, %v1532_v48 }
  0xdc   : > { %1046 = vtanh.f32 %v239_v16  ;;  %v310_v1 = vmul.f32 %v1499_v61, %v1541_v56  ;;  %v318_v62 = vmul.f32 %v1499_v61, %v1554_v60  ;;  %v319_v0 = vmul.f32 %v1499_v61, %v1557_v63 }
  0xdd   : > { %1048 = vtanh.f32 %v251_v17 }
  0xe0   : > { %v1507_v4 = vpop.permute.xlu1 %313 }
  0xe1   : > { %v316_v9 = vadd.f32 %v1507_v4, %v310_v1  ;;  %v321_v34 = vadd.f32 %v319_v0, %v1507_v4 }
  0xe4   : > { %v1037_v27 = vpop.eup %1036 }
  0xe5   : > { %v1512_v13 = vpop.permute.xlu1 %347  ;;  %v1039_v29 = vpop.eup %1038  ;;  %v281_v35 = vmul.f32 %v1037_v27, %v1495_v55 }
  0xe6   : > { %v1041_v30 = vpop.eup %1040  ;;  %v286_v36 = vmul.f32 %v1039_v29, %v1495_v55  ;;  %v358_v20 = vmul.f32 %v1512_v13, %v1554_v60  ;;  %v359_v25 = vmul.f32 %v1512_v13, %v1557_v63  ;;  %v328_v29 = vadd.f32 %v326_v3, %v316_v9 }
  0xe7   : > { %v1043_v31 = vpop.eup %1042  ;;  %v302_v40 = vmul.f32 %v1041_v30, %v294_v19  ;;  %v1534_v49 = vadd.f32 %v281_v35, %v233_v10 }
  0xe8   : > { %v1045_v33 = vpop.eup %1044  ;;  %v303_v45 = vmul.f32 %v1043_v31, %v294_v19  ;;  %v1536_v50 = vadd.f32 %v286_v36, %v238_v11  ;;  %v350_v11 = vmul.f32 %v1512_v13, %v1541_v56 }
  0xe9   : > { %v1047_v37 = vpop.eup %1046  ;;  %v296_v44 = vmul.f32 %v1045_v33, %v294_v19  ;;  %v1538_v54 = vadd.f32 %v302_v40, %v256_v12  ;;  %v327_v2 = vmul.f32 %v324_v24, %v1534_v49 }
  0xea   : > { %v1514_v18 = vpop.permute.xlu1 %335  ;;  %v1049_v39 = vpop.eup %1048  ;;  %v287_v43 = vmul.f32 %v1047_v37, %v1495_v55  ;;  %v1543_v55 = vadd.f32 %v265_v42, %v215_v5  ;;  %v1551_v59 = vadd.f32 %v303_v45, %v257_v14  ;;  %v330_v5 = vmul.f32 %v324_v24, %v1536_v50 }
  0xeb   : > { %v297_v51 = vmul.f32 %v1049_v39, %v294_v19  ;;  %v1549_v53 = vadd.f32 %v296_v44, %v250_v15  ;;  %v382_v8 = vmul.f32 %v376_v52, %v1538_v54  ;;  %v320_v19 = vadd.f32 %v318_v62, %v1507_v4 }
  0xec   : > { %v1545_v57 = vadd.f32 %v287_v43, %v239_v16  ;;  %v311_v7 = vmul.f32 %v1499_v61, %v1543_v55  ;;  %v383_v14 = vmul.f32 %v376_v52, %v1551_v59  ;;  %v428_v16 = vpop.permute.xlu0 %427  ;;  %v356_v30 = vadd.f32 %v1520_v32, %v350_v11 }
  0xed   : > { %v1564_v6 = vadd.f32 %v297_v51, %v251_v17  ;;  %v378_v12 = vmul.f32 %v376_v52, %v1549_v53  ;;  %v351_v17 = vmul.f32 %v1512_v13, %v1543_v55  ;;  %v338_v22 = vmul.f32 %v1514_v18, %v1549_v53 }
  0xee   : > { %v331_v10 = vmul.f32 %v324_v24, %v1545_v57  ;;  %v317_v15 = vadd.f32 %v1507_v4, %v311_v7  ;;  %v342_v31 = vmul.f32 %v1514_v18, %v1538_v54  ;;  %v332_v37 = vadd.f32 %v330_v5, %v320_v19 }
  0xef   : > { %v1516_v21 = vpop.permute.xlu1 %363  ;;  %v379_v24 = vmul.f32 %v376_v52, %v1564_v6  ;;  %v339_v26 = vmul.f32 %v1514_v18, %v1564_v6  ;;  %v357_v13 = vadd.f32 %v1520_v32, %v351_v17  ;;  %v360_v39 = vadd.f32 %v358_v20, %v1520_v32 }
  0xf0   : > { %v366_v23 = vmul.f32 %v1516_v21, %v1532_v48  ;;  %v367_v27 = vmul.f32 %v1516_v21, %v1534_v49  ;;  %v370_v33 = vmul.f32 %v1516_v21, %v1536_v50  ;;  %v329_v35 = vadd.f32 %v327_v2, %v317_v15  ;;  %v444_v44 = vpop.permute.xlu0 %443 }
  0xf1   : > { %v371_v36 = vmul.f32 %v1516_v21, %v1545_v57  ;;  %v1608_v40 = vadd.f32 %v338_v22, %v328_v29  ;;  %v361_v43 = vadd.f32 %v359_v25, %v1520_v32  ;;  %v343_v4 = vmul.f32 %v1514_v18, %v1551_v59 }
  0xf2   : > { %v368_v41 = vadd.f32 %v366_v23, %v356_v30  ;;  %v1611_v45 = vadd.f32 %v339_v26, %v329_v35  ;;  %v369_v46 = vadd.f32 %v367_v27, %v357_v13  ;;  %v430_v47 = vmul.f32 %v428_v16, %v1541_v56 }
  0xf3   : > { %v431_v21 = vmul.f32 %v428_v16, %v1543_v55  ;;  %v1617_v51 = vadd.f32 %v342_v31, %v332_v37  ;;  %v372_v52 = vadd.f32 %v370_v33, %v360_v39  ;;  %v333_v1 = vadd.f32 %v331_v10, %v321_v34 }
  0xf4   : > { %v1518_v28 = vpop.permute.xlu1 %387  ;;  %v438_v3 = vmul.f32 %v428_v16, %v1554_v60  ;;  %v439_v2 = vmul.f32 %v428_v16, %v1557_v63  ;;  %v373_v32 = vadd.f32 %v371_v36, %v361_v43  ;;  %v446_v5 = vmul.f32 %v444_v44, %v1532_v48 }
  0xf5   : > { %v447_v7 = vmul.f32 %v444_v44, %v1534_v49  ;;  %1050 = vtanh.f32 %v1608_v40  ;;  %v1624_v18 = vadd.f32 %v378_v12, %v368_v41  ;;  %v450_v62 = vmul.f32 %v444_v44, %v1536_v50 }
  0xf6   : > { %v1627_v0 = vadd.f32 %v343_v4, %v333_v1  ;;  %1052 = vtanh.f32 %v1611_v45  ;;  %v1630_v9 = vadd.f32 %v379_v24, %v369_v46  ;;  %v1633_v11 = vadd.f32 %v382_v8, %v372_v52 }
  0xf7   : > { %1054 = vtanh.f32 %v1617_v51  ;;  %v390_v15 = vmul.f32 %v1518_v28, %v1541_v56  ;;  %v1639_v16 = vadd.f32 %v383_v14, %v373_v32  ;;  %v391_v17 = vmul.f32 %v1518_v28, %v1543_v55 }
  0xf8   : > { %v398_v19 = vmul.f32 %v1518_v28, %v1554_v60  ;;  %1056 = vtanh.f32 %v1624_v18  ;;  %v399_v55 = vmul.f32 %v1518_v28, %v1557_v63  ;;  %v451_v36 = vmul.f32 %v444_v44, %v1545_v57 }
  0xf9   : > { %v1525_v38 = vpop.permute.xlu1 %393  ;;  %1058 = vtanh.f32 %v1630_v9 }
  0xfa   : > { %v396_v8 = vadd.f32 %v1525_v38, %v390_v15  ;;  %v397_v60 = vadd.f32 %v1525_v38, %v391_v17  ;;  %v400_v14 = vadd.f32 %v398_v19, %v1525_v38  ;;  %1060 = vtanh.f32 %v1633_v11 }
  0xfb   : > { %v401_v25 = vadd.f32 %v399_v55, %v1525_v38  ;;  %1062 = vtanh.f32 %v1639_v16 }
  0xfc   : > { %1064 = vtanh.f32 %v1627_v0 }
  0xfe   : > { %v1547_v58 = vpop.permute.xlu1 %403 }
  0xff   : > { %v406_v12 = vmul.f32 %v1547_v58, %v1532_v48  ;;  %v407_v20 = vmul.f32 %v1547_v58, %v1534_v49  ;;  %v410_v56 = vmul.f32 %v1547_v58, %v1536_v50  ;;  %v411_v23 = vmul.f32 %v1547_v58, %v1545_v57 }
 0x101   : > { %v408_v22 = vadd.f32 %v406_v12, %v396_v8  ;;  %v409_v28 = vadd.f32 %v407_v20, %v397_v60  ;;  %v412_v26 = vadd.f32 %v410_v56, %v400_v14  ;;  %v413_v34 = vadd.f32 %v411_v23, %v401_v25 }
 0x102   : > { %v1051_v4 = vpop.eup %1050 }
 0x103   : > { %v1582_v61 = vpop.permute.xlu1 %415  ;;  %v1053_v57 = vpop.eup %1052 }
 0x104   : > { %v418_v48 = vmul.f32 %v1582_v61, %v1549_v53  ;;  %v419_v49 = vmul.f32 %v1582_v61, %v1564_v6  ;;  %v422_v50 = vmul.f32 %v1582_v61, %v1538_v54  ;;  %v423_v29 = vmul.f32 %v1582_v61, %v1551_v59 }
 0x106   : > { %v1666_v27 = vadd.f32 %v418_v48, %v408_v22  ;;  %v1671_v58 = vadd.f32 %v419_v49, %v409_v28  ;;  %v1674_v35 = vadd.f32 %v422_v50, %v412_v26  ;;  %v1680_v41 = vadd.f32 %v423_v29, %v413_v34 }
 0x108   : > { %v434_v42 = vpop.permute.xlu1 %433  ;;  %1066 = vtanh.f32 %v1666_v27 }
 0x109   : > { %v436_v63 = vadd.f32 %v434_v42, %v430_v47  ;;  %v437_v30 = vadd.f32 %v434_v42, %v431_v21  ;;  %v440_v31 = vadd.f32 %v438_v3, %v434_v42  ;;  %v441_v38 = vadd.f32 %v439_v2, %v434_v42  ;;  %v486_v3 = vpop.permute.xlu0 %485 }
 0x10a   : > { %1068 = vtanh.f32 %v1671_v58 }
 0x10b   : > { %v448_v37 = vadd.f32 %v446_v5, %v436_v63  ;;  %v449_v43 = vadd.f32 %v447_v7, %v437_v30  ;;  %v452_v42 = vadd.f32 %v450_v62, %v440_v31  ;;  %1070 = vtanh.f32 %v1674_v35 }
 0x10c   : > { %v453_v44 = vadd.f32 %v451_v36, %v441_v38  ;;  %1072 = vtanh.f32 %v1680_v41 }
 0x10d   : > { %v456_v10 = vpop.permute.xlu1 %455  ;;  %v518_v12 = vpop.permute.xlu0 %517 }
 0x10e   : > { %v458_v33 = vmul.f32 %v456_v10, %v1549_v53  ;;  %v459_v13 = vmul.f32 %v456_v10, %v1564_v6  ;;  %v462_v61 = vmul.f32 %v456_v10, %v1538_v54  ;;  %v463_v53 = vmul.f32 %v456_v10, %v1551_v59  ;;  %v1055_v54 = vpop.eup %1054 }
 0x10f   : > { %v1057_v52 = vpop.eup %1056 }
 0x110   : > { %v1685_v6 = vadd.f32 %v458_v33, %v448_v37  ;;  %v1688_v46 = vadd.f32 %v459_v13, %v449_v43  ;;  %v1690_v47 = vadd.f32 %v462_v61, %v452_v42  ;;  %v1693_v21 = vadd.f32 %v463_v53, %v453_v44  ;;  %v1059_v1 = vpop.eup %1058 }
 0x111   : > { %v1061_v2 = vpop.eup %1060  ;;  %v488_v20 = vmul.f32 %v1057_v52, %v486_v3  ;;  %v489_v8 = vmul.f32 %v1059_v1, %v486_v3  ;;  %v584_v29 = vpop.permute.xlu0 %583 }
 0x112   : > { %v470_v24 = vpop.permute.xlu1 %469  ;;  %1074 = vtanh.f32 %v1685_v6  ;;  %v1063_v5 = vpop.eup %1062  ;;  %v494_v56 = vmul.f32 %v1061_v2, %v486_v3 }
 0x113   : > { %1076 = vtanh.f32 %v1688_v46  ;;  %v472_v7 = vmul.f32 %v1051_v4, %v470_v24  ;;  %v473_v62 = vmul.f32 %v1053_v57, %v470_v24  ;;  %v478_v10 = vmul.f32 %v1055_v54, %v470_v24  ;;  %v1065_v15 = vpop.eup %1064 }
 0x114   : > { %1078 = vtanh.f32 %v1690_v47  ;;  %v495_v48 = vmul.f32 %v1063_v5, %v486_v3  ;;  %v479_v49 = vmul.f32 %v1065_v15, %v470_v24  ;;  %v490_v30 = vadd.f32 %v488_v20, %v1624_v18 }
 0x115   : > { %1080 = vtanh.f32 %v1693_v21  ;;  %v1067_v17 = vpop.eup %1066  ;;  %v474_v14 = vadd.f32 %v472_v7, %v1608_v40  ;;  %v475_v22 = vadd.f32 %v473_v62, %v1611_v45  ;;  %v480_v23 = vadd.f32 %v478_v10, %v1617_v51  ;;  %v600_v10 = vpop.permute.xlu0 %599 }
 0x116   : > { %v491_v31 = vadd.f32 %v489_v8, %v1630_v9  ;;  %v496_v33 = vadd.f32 %v494_v56, %v1633_v11  ;;  %v1708_v24 = vadd.f32 %v495_v48, %v1639_v16  ;;  %v481_v45 = vadd.f32 %v479_v49, %v1627_v0 }
 0x117   : > { %v502_v39 = vpop.permute.xlu1 %501  ;;  %v1069_v19 = vpop.eup %1068  ;;  %v586_v51 = vmul.f32 %v584_v29, %v474_v14  ;;  %v587_v38 = vmul.f32 %v584_v29, %v475_v22  ;;  %v594_v13 = vmul.f32 %v584_v29, %v480_v23 }
 0x118   : > { %v1071_v60 = vpop.eup %1070  ;;  %v504_v50 = vmul.f32 %v1067_v17, %v502_v39  ;;  %v505_v25 = vmul.f32 %v1069_v19, %v502_v39  ;;  %v595_v62 = vmul.f32 %v584_v29, %v481_v45  ;;  %v603_v29 = vmul.f32 %v600_v10, %v491_v31 }
 0x119   : > { %v510_v28 = vmul.f32 %v1071_v60, %v502_v39  ;;  %v1073_v63 = vpop.eup %1072 }
 0x11a   : > { %v511_v37 = vmul.f32 %v1073_v63, %v502_v39  ;;  %v1712_v61 = vadd.f32 %v504_v50, %v1666_v27  ;;  %v1715_v18 = vadd.f32 %v505_v25, %v1671_v58  ;;  %v624_v25 = vpop.permute.xlu0 %623 }
 0x11b   : > { %v1718_v9 = vadd.f32 %v510_v28, %v1674_v35 }
 0x11c   : > { %v532_v59 = vpop.permute.xlu1 %531  ;;  %v513_v5 = vadd.f32 %v511_v37, %v1680_v41  ;;  %v607_v37 = vmul.f32 %v600_v10, %v1708_v24 }
 0x11d   : > { %v534_v16 = vmul.f32 %v532_v59, %v474_v14  ;;  %v535_v43 = vmul.f32 %v532_v59, %v475_v22  ;;  %v542_v53 = vmul.f32 %v532_v59, %v480_v23  ;;  %v543_v0 = vmul.f32 %v532_v59, %v481_v45 }
 0x11f   : > { %v1075_v26 = vpop.eup %1074 }
 0x120   : > { %v1077_v40 = vpop.eup %1076  ;;  %v520_v4 = vmul.f32 %v1075_v26, %v518_v12 }
 0x121   : > { %v1699_v32 = vpop.permute.xlu1 %537  ;;  %v1079_v36 = vpop.eup %1078  ;;  %v521_v42 = vmul.f32 %v1077_v40, %v518_v12 }
 0x122   : > { %v1081_v11 = vpop.eup %1080  ;;  %v540_v39 = vadd.f32 %v1699_v32, %v534_v16  ;;  %v541_v27 = vadd.f32 %v1699_v32, %v535_v43  ;;  %v526_v54 = vmul.f32 %v1079_v36, %v518_v12  ;;  %v544_v59 = vadd.f32 %v542_v53, %v1699_v32 }
 0x123   : > { %v527_v58 = vmul.f32 %v1081_v11, %v518_v12  ;;  %v545_v15 = vadd.f32 %v543_v0, %v1699_v32  ;;  %v522_v17 = vadd.f32 %v520_v4, %v1685_v6  ;;  %v523_v20 = vadd.f32 %v521_v42, %v1688_v46 }
 0x124   : > { %v528_v8 = vadd.f32 %v526_v54, %v1690_v47  ;;  %v602_v46 = vmul.f32 %v600_v10, %v490_v30  ;;  %v606_v47 = vmul.f32 %v600_v10, %v496_v33 }
 0x125   : > { %v626_v11 = vmul.f32 %v624_v25, %v522_v17 }
 0x126   : > { %v548_v55 = vpop.permute.xlu1 %547  ;;  %v630_v0 = vmul.f32 %v624_v25, %v528_v8 }
 0x127   : > { %v550_v57 = vmul.f32 %v548_v55, %v490_v30  ;;  %v551_v44 = vmul.f32 %v548_v55, %v491_v31  ;;  %v554_v52 = vmul.f32 %v548_v55, %v496_v33  ;;  %v555_v1 = vmul.f32 %v548_v55, %v1708_v24 }
 0x128   : > { %v529_v55 = vadd.f32 %v527_v58, %v1693_v21 }
 0x129   : > { %v552_v12 = vadd.f32 %v550_v57, %v540_v39  ;;  %v553_v19 = vadd.f32 %v551_v44, %v541_v27  ;;  %v556_v56 = vadd.f32 %v554_v52, %v544_v59  ;;  %v557_v60 = vadd.f32 %v555_v1, %v545_v15 }
 0x12a   : > { %v631_v39 = vmul.f32 %v624_v25, %v529_v55 }
 0x12b   : > { %v560_v34 = vpop.permute.xlu1 %559 }
 0x12c   : > { %v562_v35 = vmul.f32 %v560_v34, %v1712_v61  ;;  %v563_v3 = vmul.f32 %v560_v34, %v1715_v18  ;;  %v566_v7 = vmul.f32 %v560_v34, %v1718_v9  ;;  %v567_v48 = vmul.f32 %v560_v34, %v513_v5 }
 0x12e   : > { %v564_v41 = vadd.f32 %v562_v35, %v552_v12  ;;  %v565_v49 = vadd.f32 %v563_v3, %v553_v19  ;;  %v568_v14 = vadd.f32 %v566_v7, %v556_v56  ;;  %v569_v40 = vadd.f32 %v567_v48, %v557_v60 }
 0x130   : > { %v590_v2 = vpop.permute.xlu1 %589 }
 0x131   : > { %v592_v22 = vadd.f32 %v590_v2, %v586_v51  ;;  %v593_v23 = vadd.f32 %v590_v2, %v587_v38  ;;  %v596_v50 = vadd.f32 %v594_v13, %v590_v2  ;;  %v597_v45 = vadd.f32 %v595_v62, %v590_v2 }
 0x132   : > { %v627_v51 = vmul.f32 %v624_v25, %v523_v20 }
 0x133   : > { %v604_v13 = vadd.f32 %v602_v46, %v592_v22  ;;  %v605_v16 = vadd.f32 %v603_v29, %v593_v23  ;;  %v608_v43 = vadd.f32 %v606_v47, %v596_v50  ;;  %v609_v4 = vadd.f32 %v607_v37, %v597_v45 }
 0x135   : > { %v572_v32 = vpop.permute.xlu1 %571 }
 0x136   : > { %v574_v6 = vmul.f32 %v572_v32, %v522_v17  ;;  %v575_v28 = vmul.f32 %v572_v32, %v523_v20  ;;  %v578_v63 = vmul.f32 %v572_v32, %v528_v8  ;;  %v579_v26 = vmul.f32 %v572_v32, %v529_v55  ;;  %v668_v17 = vpop.permute.xlu0 %667 }
 0x138   : > { %v576_v34 = vadd.f32 %v574_v6, %v564_v41  ;;  %v577_v21 = vadd.f32 %v575_v28, %v565_v49  ;;  %v580_v36 = vadd.f32 %v578_v63, %v568_v14  ;;  %v581_v38 = vadd.f32 %v579_v26, %v569_v40 }
 0x13a   : > { %1082 = vtanh.f32 %v576_v34  ;;  %v612_v53 = vpop.permute.xlu1 %611 }
 0x13b   : > { %1084 = vtanh.f32 %v577_v21  ;;  %v614_v30 = vmul.f32 %v612_v53, %v1712_v61  ;;  %v615_v31 = vmul.f32 %v612_v53, %v1715_v18  ;;  %v618_v33 = vmul.f32 %v612_v53, %v1718_v9 }
 0x13c   : > { %1086 = vtanh.f32 %v580_v36  ;;  %v619_v42 = vmul.f32 %v612_v53, %v513_v5 }
 0x13d   : > { %1088 = vtanh.f32 %v581_v38  ;;  %v616_v24 = vadd.f32 %v614_v30, %v604_v13  ;;  %v617_v57 = vadd.f32 %v615_v31, %v605_v16  ;;  %v620_v44 = vadd.f32 %v618_v33, %v608_v43 }
 0x13e   : > { %v621_v27 = vadd.f32 %v619_v42, %v609_v4 }
 0x13f   : > { %v628_v54 = vadd.f32 %v626_v11, %v616_v24  ;;  %v629_v52 = vadd.f32 %v627_v51, %v617_v57  ;;  %v632_v58 = vadd.f32 %v630_v0, %v620_v44  ;;  %v638_v1 = vpop.permute.xlu1 %637 }
 0x140   : > { %v633_v35 = vadd.f32 %v631_v39, %v621_v27 }
 0x141   : > { %1090 = vtanh.f32 %v628_v54 }
 0x142   : > { %1092 = vtanh.f32 %v629_v52 }
 0x143   : > { %1094 = vtanh.f32 %v632_v58 }
 0x144   : > { %1096 = vtanh.f32 %v633_v35  ;;  %v654_v61 = vpop.permute.xlu1 %653 }
 0x147   : > { %v1083_v18 = vpop.eup %1082 }
 0x148   : > { %v1085_v9 = vpop.eup %1084  ;;  %v640_v3 = vmul.f32 %v1083_v18, %v638_v1 }
 0x149   : > { %v1087_v2 = vpop.eup %1086  ;;  %v641_v59 = vmul.f32 %v1085_v9, %v638_v1  ;;  %v674_v62 = vpop.permute.xlu1 %673 }
 0x14a   : > { %v1089_v5 = vpop.eup %1088  ;;  %v646_v7 = vmul.f32 %v1087_v2, %v638_v1  ;;  %v642_v15 = vadd.f32 %v640_v3, %v576_v34 }
 0x14b   : > { %v647_v10 = vmul.f32 %v1089_v5, %v638_v1  ;;  %v643_v12 = vadd.f32 %v641_v59, %v577_v21 }
 0x14c   : > { %v648_v19 = vadd.f32 %v646_v7, %v580_v36  ;;  %v670_v55 = vmul.f32 %v668_v17, %v642_v15 }
 0x14d   : > { %v649_v8 = vadd.f32 %v647_v10, %v581_v38  ;;  %v671_v49 = vmul.f32 %v668_v17, %v643_v12 }
 0x14e   : > { %v1091_v20 = vpop.eup %1090  ;;  %v684_v14 = vpop.permute.xlu1 %683  ;;  %v678_v50 = vmul.f32 %v668_v17, %v648_v19  ;;  %v676_v63 = vadd.f32 %v674_v62, %v670_v55 }
 0x14f   : > { %v1093_v56 = vpop.eup %1092  ;;  %v656_v48 = vmul.f32 %v1091_v20, %v654_v61  ;;  %v679_v6 = vmul.f32 %v668_v17, %v649_v8  ;;  %v677_v29 = vadd.f32 %v674_v62, %v671_v49 }
 0x150   : > { %v1095_v60 = vpop.eup %1094  ;;  %v657_v41 = vmul.f32 %v1093_v56, %v654_v61  ;;  %v680_v45 = vadd.f32 %v678_v50, %v674_v62 }
 0x151   : > { %v1097_v22 = vpop.eup %1096  ;;  %v662_v23 = vmul.f32 %v1095_v60, %v654_v61  ;;  %v658_v32 = vadd.f32 %v656_v48, %v628_v54  ;;  %v681_v36 = vadd.f32 %v679_v6, %v674_v62 }
 0x152   : > { %v663_v25 = vmul.f32 %v1097_v22, %v654_v61  ;;  %v659_v28 = vadd.f32 %v657_v41, %v629_v52 }
 0x153   : > { %v664_v26 = vadd.f32 %v662_v23, %v632_v58  ;;  %v686_v46 = vmul.f32 %v684_v14, %v658_v32 }
 0x154   : > { %v665_v47 = vadd.f32 %v663_v25, %v633_v35  ;;  %v687_v40 = vmul.f32 %v684_v14, %v659_v28 }
 0x155   : > { %v688_v34 = vadd.f32 %v686_v46, %v676_v63  ;;  %v690_v21 = vmul.f32 %v684_v14, %v664_v26 }
 0x156   : > { %v689_v37 = vadd.f32 %v687_v40, %v677_v29  ;;  %v691_v11 = vmul.f32 %v684_v14, %v665_v47 }
 0x157   : > { %v692_v51 = vadd.f32 %v690_v21, %v680_v45  ;;  %v847_v38 = vmul.f32 -1.442695, %v688_v34 }
 0x158   : > { %v693_v13 = vadd.f32 %v691_v11, %v681_v36  ;;  %v848_v16 = vmul.f32 -1.442695, %v689_v37 }
 0x159   : > { %1098 = vpow2.f32 %v847_v38  ;;  %v849_v43 = vmul.f32 -1.442695, %v692_v51 }
 0x15a   : > { %1100 = vpow2.f32 %v848_v16  ;;  %v850_v53 = vmul.f32 -1.442695, %v693_v13 }
 0x15b   : > { %1102 = vpow2.f32 %v849_v43 }
 0x15c   : > { %1104 = vpow2.f32 %v850_v53 }
 0x166   : > { %v1099_v30 = vpop.eup %1098 }
 0x167   : > { %v1101_v31 = vpop.eup %1100  ;;  %v700_v33 = vadd.f32 1.0, %v1099_v30 }
 0x168   : > { %v1103_v0 = vpop.eup %1102  ;;  %v701_v4 = vadd.f32 1.0, %v1101_v31 }
 0x169   : > { %v1105_v42 = vpop.eup %1104  ;;  %1106 = vrcp.f32 %v700_v33  ;;  %v712_v24 = vadd.f32 1.0, %v1103_v0 }
 0x16a   : > { %1108 = vrcp.f32 %v701_v4  ;;  %v713_v57 = vadd.f32 1.0, %v1105_v42 }
 0x16b   : > { %1110 = vrcp.f32 %v712_v24 }
 0x16c   : > { %1112 = vrcp.f32 %v713_v57 }
 0x176   : > { %v1107_v44 = vpop.eup %1106 }
 0x177   : > { %v1109_v39 = vpop.eup %1108 }
 0x178   : > { %v1111_v27 = vpop.eup %1110 }
 0x179   : > { %v1113_v54 = vpop.eup %1112  ;;  %v718_v52 = vsub.f32 %v1107_v44, %v1111_v27 }
 0x17a   : > { %v719_v58 = vsub.f32 %v1109_v39, %v1113_v54 }
 0x17b   : > { %720 = vst [vmem:[%s197_s19] sm:$0xff] %v718_v52 }
 0x17c   : > { %721 = vst [vmem:[%s197_s19 + $0x8] sm:$0xff] %v719_v58 }
 0x17d   : > { %1181 = shalt.err (!%p1178_p3)
}
 0x17e   : > { %s1182_s27 = scalar_lea.hbm %s1743_s16, 256  ;;  %s1186_s29 = scalar_lea.hbm %s1787_s2, 512 }
 0x17f   : > { %p1183_p5 = scmp.ne.s32.totalorder %s1743_s16, %s1182_s27  ;;  %p1187_p4 = scmp.lt.s32.totalorder %s1743_s16, %s1787_s2 }
 0x180   : > { %p1188_p10 = scmp.lt.s32.totalorder %s1186_s29, %s1182_s27 }
 0x181   : > { %p1184_p7 = pnand %p1183_p5, %p1405_p0 }
 0x182   : > { %p1189_p9 = por %p1188_p10, %p1187_p4 }
 0x183   : > { %p1185_p6 = pneg %p1184_p7 }
 0x185   : > { %p1190_p1 = pnand %p1189_p9, %p1185_p6 }
 0x187   : > { %1193 = shalt.err (!%p1190_p1)
}
 0x188   : > { %864 = dma.vmem_to_hbm [thread:$0]  (%p1405_p0), %s740_s21, 256, %s1743_s16, %s723_s22  }
 0x189 PF: > { %s751_s6 = sand.u32 1, %s1232_s9   ;;  %p1798_p8 = scmp.ne.s32.totalorder %s1792_s20, 0 }
 0x18a   : > { %p1799_p13 = scmp.ge.s32.totalorder %s1252_s14, 2  ;;  %s752_s7 = scalar_lea.sflag [#allocation4], %s751_s6 }
 0x18c   : > { %p875_p11 = pnand %p1799_p13, %p1798_p8 }
 0x18e   : > { %p876_p2 = pneg %p875_p11 }
 0x190   : > { %1227 = dma.done.wait (%p876_p2), %s752_s7, 256  }
 0x191   : > { %1229 = vsyncadd (%p876_p2), %s752_s7, 4294967040  ;;  %s19_s14 = sadd.s32 1, %s1252_s14   ;;  %s1800_s9 = smov %s1236_s10 }
 0x192   : > { %p16_p12 = scmp.ge.s32.totalorder %s19_s14, 4   ;;  %s1801_s10 = smov %s1240_s11 }
 0x193   : > { %s1802_s11 = smov %s1411_s5  ;;  %s1803_s12 = smov %s1248_s13 }
 0x194   : > { %s1804_s13 = smov %s1806_s25  ;;  %18 = sbr.rel (!%p16_p12) target bundleno = 7 (0x7), region = 78 }
 0x199   :  { %757 = vsyncpa [#allocation3], 1 }
 0x19a   :  { %759 = vsyncpa [#allocation3 + $0x1], 1 }
 0x19b   :  { %760 = vsyncpa [#allocation6], 1 }
 0x19c   :  { %761 = vsyncpa [#allocation4], 1 }
 0x19d   :  { %763 = vsyncpa [#allocation4 + $0x1], 1 }

</bundles_post_ra>
